<compile_context>
chip_gen: v7x
topology: tpu7x:2x2x1
jax: 0.10.0
libtpu: 0.0.40
codegen_flags: <defaults>
</compile_context>

<pallas_src>
import jax
import jax.numpy as jnp
from jax.experimental import pallas as pl
from jax.experimental.pallas import tpu as pltpu

KH, KW = 3, 3
BN_EPS = 1e-5
LANE = 128
VMEM_LIMIT = 32 * 1024 * 1024


def _round_up(x, m):
    return ((x + m - 1) // m) * m


def conv_stats_kernel(p_ref, w_ref, y_ref, stats_ref):
    """One MXU matmul per grid step + BN partial statistics.

    p_ref:     (TR, K_p)      im2col patches (K = KH*KW*Cin, lane-padded)
    w_ref:     (K_p, Cout_p)  im2col weights
    y_ref:     (TR, Cout_p)   conv output (pre-BN)
    stats_ref: (2, Cout_p)    row 0 = per-channel sum, row 1 = sum of squares
    """
    y = jnp.dot(p_ref[...], w_ref[...], preferred_element_type=jnp.float32)
    y_ref[...] = y
    s = jnp.sum(y, axis=0, keepdims=True)
    ss = jnp.sum(y * y, axis=0, keepdims=True)
    stats_ref[...] = jnp.concatenate([s, ss], axis=0)


def bn_apply_kernel(y_ref, scale_ref, bias_ref, o_ref):
    """y * scale + bias, transposed in-tile so the store is NCHW-ordered.

    y_ref: (TR, Cout_p)   scale/bias: (1, Cout_p)   o_ref: (Cout, TR)
    """
    yb = y_ref[...] * scale_ref[...] + bias_ref[...]
    cout = o_ref.shape[0]
    o_ref[...] = jnp.transpose(yb)[:cout, :].astype(o_ref.dtype)


def conv_bn2d(x_nchw, weight_oihw, gamma, beta):
    """Equivalent of ConvBn2d.forward for NCHW float32 input."""
    N, Cin, H, W = x_nchw.shape
    Cout = weight_oihw.shape[0]
    M = H * W
    K = KH * KW * Cin
    K_p = _round_up(K, LANE)
    Cout_p = _round_up(Cout, LANE)
    TR = min(512, _round_up(M, LANE))      # lane-dense row tile per grid step
    M_pad = _round_up(M, TR)
    Gm = M_pad // TR

    # --- glue (XLA): NCHW -> NHWC, spatial pad (1,1), im2col, lane pad K ---
    x_nhwc = jnp.transpose(x_nchw, (0, 2, 3, 1))
    x_sp = jnp.pad(x_nhwc, ((0, 0), (1, 1), (1, 1), (0, 0)))
    taps = [x_sp[:, kh:kh + H, kw:kw + W, :]
            for kh in range(KH) for kw in range(KW)]
    patches = jnp.concatenate(taps, axis=-1).reshape(N, M, K)
    patches = jnp.pad(patches, ((0, 0), (0, M_pad - M), (0, K_p - K)))

    # OIHW -> (KH, KW, Cin, Cout) -> (K, Cout); same K ordering as the patches.
    w = jnp.transpose(weight_oihw, (2, 3, 1, 0)).reshape(K, Cout)
    w = jnp.pad(w, ((0, K_p - K), (0, Cout_p - Cout)))

    y_flat, stats = pl.pallas_call(
        conv_stats_kernel,
        grid=(N, Gm),
        out_shape=(
            jax.ShapeDtypeStruct((N, M_pad, Cout_p), jnp.float32),
            jax.ShapeDtypeStruct((N, Gm, 2, Cout_p), jnp.float32),
        ),
        in_specs=[
            pl.BlockSpec((None, TR, K_p), lambda n, m: (n, m, 0)),
            pl.BlockSpec((K_p, Cout_p), lambda n, m: (0, 0)),
        ],
        out_specs=(
            pl.BlockSpec((None, TR, Cout_p), lambda n, m: (n, m, 0)),
            pl.BlockSpec((None, None, 2, Cout_p), lambda n, m: (n, m, 0, 0)),
        ),
        compiler_params=pltpu.CompilerParams(
            dimension_semantics=("parallel", "parallel"),
            vmem_limit_bytes=VMEM_LIMIT),
        cost_estimate=pl.CostEstimate(
            flops=2 * N * M_pad * K_p * Cout_p,
            transcendentals=0,
            bytes_accessed=(patches.size + w.size
                            + N * M_pad * Cout_p + N * Gm * 2 * Cout_p) * 4),
    )(patches, w)

    # Global BN statistics (biased variance, BatchNorm2d training mode). Padded
    # rows are all-zero and contribute nothing to either partial sum.
    # TODO(synk): for very large N*H*W use a shifted / Welford reduction;
    # E[x^2] - E[x]^2 in f32 cancels catastrophically when |mean| >> std.
    m_total = N * M
    totals = jnp.sum(stats, axis=(0, 1))            # (2, Cout_p)
    mean = totals[0] / m_total
    var = jnp.maximum(totals[1] / m_total - mean * mean, 0.0)
    inv_std = jax.lax.rsqrt(var + BN_EPS)
    gamma_p = jnp.pad(gamma, (0, Cout_p - Cout))
    beta_p = jnp.pad(beta, (0, Cout_p - Cout))
    scale = (gamma_p * inv_std).reshape(1, Cout_p)
    bias = (beta_p - mean * gamma_p * inv_std).reshape(1, Cout_p)

    out_ncm = pl.pallas_call(
        bn_apply_kernel,
        grid=(N, Gm),
        out_shape=jax.ShapeDtypeStruct((N, Cout, M_pad), x_nchw.dtype),
        in_specs=[
            pl.BlockSpec((None, TR, Cout_p), lambda n, m: (n, m, 0)),
            pl.BlockSpec((1, Cout_p), lambda n, m: (0, 0)),
            pl.BlockSpec((1, Cout_p), lambda n, m: (0, 0)),
        ],
        out_specs=pl.BlockSpec((None, Cout, TR), lambda n, m: (n, 0, m)),
        compiler_params=pltpu.CompilerParams(
            dimension_semantics=("parallel", "parallel"),
            vmem_limit_bytes=VMEM_LIMIT),
        cost_estimate=pl.CostEstimate(
            flops=2 * N * M_pad * Cout_p,
            transcendentals=0,
            bytes_accessed=(N * M_pad * Cout_p + N * Cout * M_pad
                            + 2 * Cout_p) * 4),
    )(y_flat, scale, bias)

    out = out_ncm if M_pad == M else out_ncm[:, :, :M]
    return out.reshape(N, Cout, H, W)               # already NCHW-ordered


def reference_conv_bn2d(x_nchw, weight_oihw, gamma, beta):
    """Pure-JAX reference: lax conv + training-mode batch norm."""
    y = jax.lax.conv_general_dilated(
        x_nchw, weight_oihw, window_strides=(1, 1),
        padding=((1, 1), (1, 1)),
        dimension_numbers=("NCHW", "OIHW", "NCHW"))
    mean = jnp.mean(y, axis=(0, 2, 3), keepdims=True)
    var = jnp.mean((y - mean) ** 2, axis=(0, 2, 3), keepdims=True)
    g = gamma.reshape(1, -1, 1, 1)
    b = beta.reshape(1, -1, 1, 1)
    return (y - mean) * jax.lax.rsqrt(var + BN_EPS) * g + b


if __name__ == "__main__":
    # Small shapes consistent with the module: batch=2, in_channels=4,
    # out_channels=8, spatial=16x16.
    N, C_IN, C_OUT, H, W = 2, 4, 8, 16, 16

    key = jax.random.PRNGKey(0)
    k_x, k_w = jax.random.split(key, 2)

    x = jax.random.normal(k_x, (N, C_IN, H, W), dtype=jnp.float32)

    # Deterministic parameter init following nn.Conv2d / nn.BatchNorm2d defaults.
    fan_in = C_IN * KH * KW
    bound = 1.0 / jnp.sqrt(fan_in)
    conv_weight = jax.random.uniform(
        k_w, (C_OUT, C_IN, KH, KW), minval=-bound, maxval=bound,
        dtype=jnp.float32)
    bn_gamma = jnp.ones((C_OUT,), dtype=jnp.float32)
    bn_beta = jnp.zeros((C_OUT,), dtype=jnp.float32)

    out = conv_bn2d(x, conv_weight, bn_gamma, bn_beta)
    out = jax.block_until_ready(out)

    ref = jax.block_until_ready(
        reference_conv_bn2d(x, conv_weight, bn_gamma, bn_beta))

    assert out.shape == (N, C_OUT, H, W), out.shape
    assert jnp.allclose(out, ref, atol=1e-4, rtol=1e-4), (
        float(jnp.max(jnp.abs(out - ref))))

    print("KERNEL_OK")
</pallas_src>

<mosaic_0001>
module attributes {stable_mosaic.version = 11 : i64} {
  func.func @conv_stats_kernel(%arg0: i32, %arg1: i32, %arg2: memref<1x256x128xf32, #tpu.memory_space<vmem>>, %arg3: memref<128x128xf32, #tpu.memory_space<vmem>>, %arg4: memref<1x256x128xf32, #tpu.memory_space<vmem>>, %arg5: memref<1x1x2x128xf32, #tpu.memory_space<vmem>>) attributes {dimension_semantics = [#tpu.dimension_semantics<parallel>, #tpu.dimension_semantics<parallel>], iteration_bounds = array<i64: 2, 1>, scalar_prefetch = 0 : i64, scratch_operands = 0 : i64, tpu.core_type = #tpu.core_type<tc>, window_params = [{transform_indices = @transform_0, window_bounds = array<i64: 1, 256, 128>}, {pipeline_mode = #tpu.pipeline_mode<synchronous>, transform_indices = @transform_1, window_bounds = array<i64: 128, 128>}, {transform_indices = @transform_2, window_bounds = array<i64: 1, 256, 128>}, {transform_indices = @transform_3, window_bounds = array<i64: 1, 1, 2, 128>}]} {
    %c0 = arith.constant 0 : index
    %c0_0 = arith.constant 0 : index
    %c0_1 = arith.constant 0 : index
    %0 = vector.load %arg2[%c0, %c0_0, %c0_1] : memref<1x256x128xf32, #tpu.memory_space<vmem>>, vector<1x256x128xf32>
    %1 = vector.shape_cast %0 : vector<1x256x128xf32> to vector<256x128xf32>
    %c0_2 = arith.constant 0 : index
    %c0_3 = arith.constant 0 : index
    %2 = vector.load %arg3[%c0_2, %c0_3] : memref<128x128xf32, #tpu.memory_space<vmem>>, vector<128x128xf32>
    %cst = arith.constant dense<0.000000e+00> : vector<256x128xf32>
    %3 = tpu.matmul %1, %2, %cst {dimension_numbers = #tpu.dot_dimension_numbers<[1], [0], [0], [1], [0, 0, 1, 1], [], []>} : vector<256x128xf32>, vector<128x128xf32>, vector<256x128xf32> -> vector<256x128xf32>
    %c0_4 = arith.constant 0 : index
    %c0_5 = arith.constant 0 : index
    %c0_6 = arith.constant 0 : index
    %4 = vector.load %arg4[%c0_4, %c0_5, %c0_6] : memref<1x256x128xf32, #tpu.memory_space<vmem>>, vector<1x256x128xf32>
    %5 = vector.shape_cast %4 : vector<1x256x128xf32> to vector<256x128xf32>
    %6 = vector.shape_cast %3 : vector<256x128xf32> to vector<1x256x128xf32>
    tpu.vector_store %arg4[%c0_4, %c0_5, %c0_6], %6 {strides = array<i32>} : memref<1x256x128xf32, #tpu.memory_space<vmem>>, vector<1x256x128xf32>,
    %cst_7 = arith.constant dense<0.000000e+00> : vector<128xf32>
    %7 = vector.multi_reduction <add>, %3, %cst_7 [0] : vector<256x128xf32> to vector<128xf32>
    %8 = vector.shape_cast %7 : vector<128xf32> to vector<1x128xf32>
    %9 = arith.mulf %3, %3 : vector<256x128xf32>
    %cst_8 = arith.constant dense<0.000000e+00> : vector<128xf32>
    %10 = vector.multi_reduction <add>, %9, %cst_8 [0] : vector<256x128xf32> to vector<128xf32>
    %11 = vector.shape_cast %10 : vector<128xf32> to vector<1x128xf32>
    %12 = tpu.concatenate %8, %11 in 0 : vector<1x128xf32>, vector<1x128xf32> -> vector<2x128xf32>
    %c0_9 = arith.constant 0 : index
    %c0_10 = arith.constant 0 : index
    %c0_11 = arith.constant 0 : index
    %c0_12 = arith.constant 0 : index
    %13 = vector.load %arg5[%c0_9, %c0_10, %c0_11, %c0_12] : memref<1x1x2x128xf32, #tpu.memory_space<vmem>>, vector<1x1x2x128xf32>
    %14 = vector.shape_cast %13 : vector<1x1x2x128xf32> to vector<2x128xf32>
    %15 = vector.shape_cast %12 : vector<2x128xf32> to vector<1x1x2x128xf32>
    tpu.vector_store %arg5[%c0_9, %c0_10, %c0_11, %c0_12], %15 {strides = array<i32>} : memref<1x1x2x128xf32, #tpu.memory_space<vmem>>, vector<1x1x2x128xf32>,
    return
  }
  func.func @transform_0(%arg0: i32, %arg1: i32) -> (i32, i32, i32) {
    %c0_i32 = arith.constant 0 : i32
    %c0_i32_0 = arith.constant 0 : i32
    return %arg0, %arg1, %c0_i32 : i32, i32, i32
  }
  func.func @transform_1(%arg0: i32, %arg1: i32) -> (i32, i32) {
    %c0_i32 = arith.constant 0 : i32
    %c0_i32_0 = arith.constant 0 : i32
    %c0_i32_1 = arith.constant 0 : i32
    return %c0_i32, %c0_i32_0 : i32, i32
  }
  func.func @transform_2(%arg0: i32, %arg1: i32) -> (i32, i32, i32) {
    %c0_i32 = arith.constant 0 : i32
    %c0_i32_0 = arith.constant 0 : i32
    return %arg0, %arg1, %c0_i32 : i32, i32, i32
  }
  func.func @transform_3(%arg0: i32, %arg1: i32) -> (i32, i32, i32, i32) {
    %c0_i32 = arith.constant 0 : i32
    %c0_i32_0 = arith.constant 0 : i32
    %c0_i32_1 = arith.constant 0 : i32
    return %arg0, %arg1, %c0_i32, %c0_i32_0 : i32, i32, i32, i32
  }
}

</mosaic_0001>

<bundles_post_ra>
// kernel: tpu_custom_call.1
= control target key start
LH: loop header
LB: loop body
LE: loop exit
PB: predicated region body
PF: predicated region fallthrough
CT: control target
= control target key end

     0   :  { %9 = vsyncpa [#allocation3], 0  ;;  %s1727_s0 = inlined_call_operand.hbm [shape: f32[2,256,128], index: 0, kind: input, shape index: {}]   ;;  %s1728_s1 = inlined_call_operand.hbm [shape: f32[128,128], index: 1, kind: input, shape index: {}]   ;;  %s1729_s2 = inlined_call_operand.hbm [shape: f32[2,256,128], index: 2, kind: output, shape index: {0}]   ;;  %s1730_s3 = inlined_call_operand.hbm [shape: f32[2,1,2,128], index: 3, kind: output, shape index: {1}]  }
   0x1   :  { %11 = vsyncpa [#allocation3 + $0x1], 0 }
   0x2   :  { %12 = vsyncpa [#allocation6], 0 }
   0x3   :  { %13 = vsyncpa [#allocation4], 0 }
   0x4   :  { %15 = vsyncpa [#allocation4 + $0x1], 0 }
   0x5   :  { %16 = vsyncpa [#allocation9], 0 }
   0x6   :  { %18 = vsyncpa [#allocation9 + $0x1], 0  ;;  %s1302_s12 = smov 0   ;;  %s1304_s13 = smov 0  }
   0x7   :  { %s1306_s14 = smov 0   ;;  %s1308_s15 = smov 0  }
   0x8   :  { %s1310_s16 = smov 0   ;;  %s1312_s17 = smov 0  }
   0x9 LB: > { %s816_s18 = sadd.s32 4294967295, %s1272_s17   ;;  %s817_s19 = sadd.s32 4294967294, %s1272_s17   ;;  %s1272_s17 = sphi %s1312_s17, %s24_s17   ;;  %s1268_s16 = sphi %s1310_s16, %s1754_s16   ;;  %s1264_s15 = sphi %s1308_s15, %s1753_s15   ;;  %s1260_s14 = sphi %s1306_s14, %s1752_s14   ;;  %s1256_s13 = sphi %s1304_s13, %s1751_s13   ;;  %s1252_s12 = sphi %s1302_s12, %s1750_s12  }
   0xa   : > { %p58_p0 = scmp.ne.s32.totalorder %s1256_s13, %s1252_s12  ;;  %p1336_p1 = scmp.eq.s32.totalorder %s816_s18, 0 }
   0xb   : > { %p1340_p2 = scmp.eq.s32.totalorder %s816_s18, 1  ;;  %p111_p3 = scmp.eq.s32.totalorder %s817_s19, 1 }
   0xc   : > { %s1735_s20 = scalar_select %p1336_p1, 1, 0 }
   0xd   : > { %s1736_s21 = scalar_select %p1340_p2, 1, 0 }
   0xe   : > { %p1346_p4 = por %p1336_p1, %p58_p0  ;;  %p818_p5 = scmp.ge.s32.totalorder %s1272_s17, 1 }
   0xf   : > { %p1351_p6 = por %p111_p3, %p58_p0  ;;  %p146_p7 = scmp.lt.s32.totalorder %s1272_s17, 3 }
  0x10   : > { %s1737_s22 = scalar_select %p1346_p4, 1, 0 }
  0x11   : > { %s1738_s23 = scalar_select %p1351_p6, 1, 0 }
  0x12   : > { %p1356_p8 = pnand %p818_p5, %p146_p7  ;;  %s1274_s25 = smov [#allocation5]  }
  0x13   : > { %s158_s26 = sshll.u32 %s1274_s25, 4  ;;  %s36_s28 = sadd.s32 1, %s1268_s16  ;;  %s159_s26 = int_to_ptr.vmem [resolvable:$true] %s158_s26 }
  0x14   : > { %s1739_s24 = scalar_select %p1356_p8, 1, 0 }
  0x15   : > { %p1024_p9 = pneg %p1356_p8  ;;  %s1096_s4 = scalar_lea.hbm %s1728_s1, 2048 }
  0x16   : > { %p1097_p12 = scmp.ne.s32.totalorder %s1728_s1, %s1096_s4  ;;  %p1103_p5 = scmp.lt.u32.totalorder %s1096_s4, %s1728_s1 }
  0x17   : > { %p1365_p11 = pnand %p1024_p9, %p1336_p1 }
  0x19   : > { %p1098_p13 = pneg %p1365_p11 }
  0x1b   : > { %p1099_p0 = pnand %p1098_p13, %p1097_p12 }
  0x1d   : > { %p1100_p3 = pneg %p1099_p0 }
  0x1f   : > { %p1105_p7 = pnand %p1103_p5, %p1100_p3 }
  0x21   : > { %1108 = shalt.err (!%p1105_p7)
}
  0x22   : > { %s1109_s9 = scalar_lea.vmem %s159_s26, 2048  ;;  %p1117_p1 = scmp.lt.s32.totalorder %s159_s26, %s159_s26 }
  0x23   : > { %p1110_p9 = scmp.ne.s32.totalorder %s159_s26, %s1109_s9  ;;  %p1118_p4 = scmp.lt.s32.totalorder %s1109_s9, %s1109_s9 }
  0x25   : > { %p1112_p10 = pnand %p1110_p9, %p1098_p13  ;;  %p1119_p8 = por %p1118_p4, %p1117_p1 }
  0x27   : > { %p1113_p6 = pneg %p1112_p10 }
  0x29   : > { %p1120_p2 = pnand %p1119_p8, %p1113_p6 }
  0x2b   : > { %1123 = shalt.err (!%p1120_p2)
}
  0x2c   : > { %s1275_s10 = smov 128   ;;  %s1276_s11 = smov 8  }
  0x2d   : > { %1027 = dma.hbm_to_vmem [thread:$0]  (!%p1365_p11), %s1728_s1, 2048, %s159_s26, [#allocation6], %s1275_s10, %s1275_s10, %s1276_s11  }
  0x2e   : > { %p38_p1 = scmp.ge.s32.totalorder %s36_s28, 2  ;;  %s45_s25 = sadd.s32 1, %s1260_s14 }
  0x2f   : > { %p52_p2 = scmp.ne.s32.totalorder %s1260_s14, %s1256_s13  ;;  %p53_p4 = scmp.eq.s32.totalorder %s1272_s17, 0 }
  0x30   : > { %s1756_s28 = smov (%p38_p1, %s36_s28), 0  ;;  %p1742_p8 = scmp.ne.s32.totalorder %s1736_s21, 0 }
  0x31   : > { %p1395_p6 = por %p53_p4, %p52_p2  ;;  %s40_s30 = ssub.s32 %s1268_s16, %s1756_s28 }
  0x32   : > { %p1401_p10 = por %p1742_p8, %p52_p2  ;;  %p1040_p12 = scmp.lt.s32.totalorder %s1272_s17, 2 }
  0x33   : > { %p43_p11 = scmp.eq.s32.totalorder %s40_s30, 0  ;;  %s172_s26 = sand.u32 1, %s1260_s14  }
  0x34   : > { %s821_s4 = sshll.u32 %s172_s26, 8  ;;  %s836_s6 = sshll.u32 %s1268_s16, 12 }
  0x35   : > { %s1410_s5 = scalar_select %p43_p11, %s1260_s14, %s45_s25  }
  0x36   : > { %s1416_s9 = scalar_lea.hbm %s1727_s0, %s836_s6  ;;  %s176_s21 = scalar_lea.vmem [#allocation2], %s821_s4 }
  0x37   : > { %s185_s18 = sshll.u32 %s176_s21, 4  ;;  %p1422_p13 = pnand %p1040_p12, %p1395_p6  ;;  %s1418_s18 = int_to_ptr.vmem [resolvable:$true] %s185_s18 }
  0x38   : > { %s1426_s25 = scalar_lea.sflag [#allocation3], %s172_s26  ;;  %s1124_s30 = scalar_lea.hbm %s1416_s9, 4096 }
  0x39   : > { %p1125_p0 = scmp.ne.s32.totalorder %s1416_s9, %s1124_s30  ;;  %p1126_p3 = pneg %p1422_p13 }
  0x3a   : > { %s1129_s29 = scalar_lea.hbm %s1727_s0, 8192  ;;  %p1130_p9 = scmp.lt.u32.totalorder %s1416_s9, %s1727_s0 }
  0x3b   : > { %p1127_p5 = pnand %p1126_p3, %p1125_p0  ;;  %p1131_p1 = scmp.lt.u32.totalorder %s1129_s29, %s1124_s30 }
  0x3c   : > { %p1133_p4 = scmp.lt.u32.totalorder %s1124_s30, %s1416_s9 }
  0x3d   : > { %p1128_p7 = pneg %p1127_p5  ;;  %p1132_p2 = por %p1131_p1, %p1130_p9 }
  0x3f   : > { %p1134_p6 = por %p1133_p4, %p1132_p2 }
  0x41   : > { %p1135_p8 = pnand %p1134_p6, %p1128_p7 }
  0x43   : > { %1138 = shalt.err (!%p1135_p8)
}
  0x44   : > { %s1139_s26 = scalar_lea.vmem %s1418_s18, 4096  ;;  %s1277_s21 = smov [#allocation2]  }
  0x45   : > { %p1140_p12 = scmp.ne.s32.totalorder %s1418_s18, %s1139_s26  ;;  %s1144_s4 = sshll.u32 %s1277_s21, 4  ;;  %s1145_s4 = int_to_ptr.vmem [resolvable:$false] %s1144_s4 }
  0x46   : > { %s1146_s6 = scalar_lea.vmem %s1145_s4, 8192  ;;  %p1147_p5 = scmp.lt.s32.totalorder %s1418_s18, %s1145_s4 }
  0x47   : > { %p1142_p11 = pnand %p1140_p12, %p1126_p3  ;;  %p1148_p9 = scmp.lt.s32.totalorder %s1146_s6, %s1139_s26 }
  0x49   : > { %p1143_p0 = pneg %p1142_p11  ;;  %p1149_p1 = por %p1148_p9, %p1147_p5 }
  0x4b   : > { %p1150_p2 = pnand %p1149_p1, %p1143_p0 }
  0x4d   : > { %1153 = shalt.err (!%p1150_p2)
}
  0x4e   : > { %1031 = dma.hbm_to_vmem [thread:$0]  (!%p1422_p13), %s1416_s9, 4096, %s1418_s18, %s1426_s25, %s1275_s10, %s1275_s10, %s1276_s11  }
  0x4f   : > { %p1745_p3 = scmp.ne.s32.totalorder %s1739_s24, 0 }
  0x50   : > { %s1460_s30 = sand.u32 (!%p1745_p3), 1, %s1256_s13   ;;  %p1746_p7 = scmp.ne.s32.totalorder (!%p1745_p3), %s1737_s22, 0 }
  0x51   : > { %197 = sbr.rel (%p1745_p3) target bundleno = 444 (0x1bc), region = 28  ;;  %s825_s29 = sshll.u32 (!%p1745_p3), %s1460_s30, 8 }
  0x52   : > { %s200_s7 = scalar_lea.sflag (!%p1745_p3), [#allocation3], %s1460_s30  ;;  %s1466_s19 = scalar_lea.vmem (!%p1745_p3), [#allocation2], %s825_s29 }
  0x58   : > { %1235 = dma.done.wait (%p1746_p7), %s200_s7, 4096  }
  0x59   : > { %1237 = vsyncadd (%p1746_p7), %s200_s7, 4294963200  ;;  %p1747_p13 = scmp.ne.s32.totalorder %s1735_s20, 0 }
  0x5b   : > { %1239 = dma.done.wait (%p1747_p13), [#allocation6], 2048  }
  0x5c   : > { %1241 = vsyncadd (%p1747_p13), [#allocation6], 4294965248  ;;  %v269_v0 = vld [vmem:[#allocation5] sm:$0xff]  ;;  %v270_v1 = vld [vmem:[#allocation5 + $0x8] sm:$0xff]  ;;  %s1512_s20 = scalar_lea.vmem [#allocation7], %s825_s29  ;;  %s837_s22 = sshll.u32 %s1264_s15, 12 }
  0x5d   : > { %v271_v2 = vld [vmem:[#allocation5 + $0x10] sm:$0xff]  ;;  %v966_v3 = vpack.c.bf16 %v270_v1, %v269_v0  ;;  %v272_v4 = vld [vmem:[#allocation5 + $0x18] sm:$0xff]  ;;  %v273_v6 = vld [vmem:[#allocation5 + $0x20] sm:$0xff]  ;;  %s672_s24 = sshll.u32 %s1512_s20, 4  ;;  %s1587_s9 = scalar_lea.hbm %s1729_s2, %s837_s22  ;;  %s1589_s24 = int_to_ptr.vmem [resolvable:$true] %s672_s24 }
  0x5e   : > { %v970_v5 = vpack.c.bf16 %v272_v4, %v271_v2  ;;  %v274_v7 = vld [vmem:[#allocation5 + $0x28] sm:$0xff]  ;;  %v237_v9 = vld [vmem:[%s1466_s19] sm:$0xff]  ;;  %v275_v10 = vld [vmem:[#allocation5 + $0x30] sm:$0xff]  ;;  %s652_s18 = scalar_lea.sflag [#allocation4], %s1460_s30  ;;  %s1154_s25 = scalar_lea.vmem %s1589_s24, 4096 }
  0x5f   : > { %967 = vmatprep.subr.bf16.mxu0 %v966_v3  ;;  %998 = vmatprep.subr.bf16.mxu1 %v966_v3  ;;  %v974_v8 = vpack.c.bf16 %v274_v7, %v273_v6  ;;  %v276_v11 = vld [vmem:[#allocation5 + $0x38] sm:$0xff]  ;;  %v277_v13 = vld [vmem:[#allocation5 + $0x40] sm:$0xff]  ;;  %v278_v14 = vld [vmem:[#allocation5 + $0x48] sm:$0xff]  ;;  %p1155_p4 = scmp.ne.s32.totalorder %s1589_s24, %s1154_s25  ;;  %s1278_s8 = smov [#allocation7]  }
  0x60   : > { %969 = vmatpush3.bf16.msra.mxu0 %v966_v3  ;;  %1006 = vmatpush3.bf16.msra.mxu1 %v966_v3  ;;  %v978_v12 = vpack.c.bf16 %v276_v11, %v275_v10  ;;  %v253_v15 = vld [vmem:[%s1466_s19 + $0x80] sm:$0xff]  ;;  %v982_v16 = vpack.c.bf16 %v278_v14, %v277_v13  ;;  %v279_v17 = vld [vmem:[#allocation5 + $0x50] sm:$0xff]  ;;  %v280_v18 = vld [vmem:[#allocation5 + $0x58] sm:$0xff]  ;;  %s1158_s26 = sshll.u32 %s1278_s8, 4  ;;  %s1159_s26 = int_to_ptr.vmem [resolvable:$false] %s1158_s26 }
  0x61   : > { %971 = vmatprep.subr.bf16.mxu0 %v970_v5  ;;  %999 = vmatprep.subr.bf16.mxu1 %v970_v5  ;;  %v986_v19 = vpack.c.bf16 %v280_v18, %v279_v17  ;;  %v281_v20 = vld [vmem:[#allocation5 + $0x60] sm:$0xff]  ;;  %v282_v21 = vld [vmem:[#allocation5 + $0x68] sm:$0xff]  ;;  %v283_v23 = vld [vmem:[#allocation5 + $0x70] sm:$0xff]  ;;  %p1156_p6 = pnand %p1155_p4, %p1401_p10  ;;  %s1160_s21 = scalar_lea.vmem %s1159_s26, 8192 }
  0x62   : > { %918 = vmatprep.mubr.f32.mxu0 %v237_v9  ;;  %942 = vmatprep.mubr.f32.mxu1 %v253_v15  ;;  %v990_v22 = vpack.c.bf16 %v282_v21, %v281_v20  ;;  %v284_v24 = vld [vmem:[#allocation5 + $0x78] sm:$0xff]  ;;  %v238_v26 = vld [vmem:[%s1466_s19 + $0x8] sm:$0xff]  ;;  %v239_v28 = vld [vmem:[%s1466_s19 + $0x10] sm:$0xff]  ;;  %p1161_p12 = scmp.lt.s32.totalorder %s1589_s24, %s1159_s26  ;;  %p1162_p11 = scmp.lt.s32.totalorder %s1160_s21, %s1154_s25 }
  0x63   : > { %v994_v25 = vpack.c.bf16 %v284_v24, %v283_v23  ;;  %v254_v27 = vld [vmem:[%s1466_s19 + $0x88] sm:$0xff]  ;;  %v255_v29 = vld [vmem:[%s1466_s19 + $0x90] sm:$0xff]  ;;  %v240_v30 = vld [vmem:[%s1466_s19 + $0x18] sm:$0xff]  ;;  %p1157_p8 = pneg %p1156_p6 }
  0x64   : > { %973 = vmatpush3.bf16.msra.mxu0 %v970_v5  ;;  %1007 = vmatpush3.bf16.msra.mxu1 %v970_v5  ;;  %v256_v31 = vld [vmem:[%s1466_s19 + $0x98] sm:$0xff]  ;;  %v241_v32 = vld [vmem:[%s1466_s19 + $0x20] sm:$0xff]  ;;  %v242_v34 = vld [vmem:[%s1466_s19 + $0x28] sm:$0xff]  ;;  %p1163_p0 = por %p1162_p11, %p1161_p12 }
  0x65   : > { %975 = vmatprep.subr.bf16.mxu0 %v974_v8  ;;  %1000 = vmatprep.subr.bf16.mxu1 %v974_v8  ;;  %v257_v33 = vld [vmem:[%s1466_s19 + $0xa0] sm:$0xff]  ;;  %v258_v35 = vld [vmem:[%s1466_s19 + $0xa8] sm:$0xff]  ;;  %v243_v36 = vld [vmem:[%s1466_s19 + $0x30] sm:$0xff] }
  0x66   : > { %v259_v37 = vld [vmem:[%s1466_s19 + $0xb0] sm:$0xff]  ;;  %v244_v38 = vld [vmem:[%s1466_s19 + $0x38] sm:$0xff]  ;;  %v245_v40 = vld [vmem:[%s1466_s19 + $0x40] sm:$0xff]  ;;  %p1164_p5 = pnand %p1163_p0, %p1157_p8 }
  0x67   : > { %v260_v39 = vld [vmem:[%s1466_s19 + $0xb8] sm:$0xff]  ;;  %v261_v41 = vld [vmem:[%s1466_s19 + $0xc0] sm:$0xff]  ;;  %v246_v42 = vld [vmem:[%s1466_s19 + $0x48] sm:$0xff] }
  0x68   : > { %977 = vmatpush3.bf16.msra.mxu0 %v974_v8  ;;  %1008 = vmatpush3.bf16.msra.mxu1 %v974_v8  ;;  %v262_v43 = vld [vmem:[%s1466_s19 + $0xc8] sm:$0xff]  ;;  %v247_v44 = vld [vmem:[%s1466_s19 + $0x50] sm:$0xff]  ;;  %v248_v46 = vld [vmem:[%s1466_s19 + $0x58] sm:$0xff] }
  0x69   : > { %979 = vmatprep.subr.bf16.mxu0 %v978_v12  ;;  %1001 = vmatprep.subr.bf16.mxu1 %v978_v12  ;;  %v263_v45 = vld [vmem:[%s1466_s19 + $0xd0] sm:$0xff]  ;;  %v264_v47 = vld [vmem:[%s1466_s19 + $0xd8] sm:$0xff]  ;;  %v249_v48 = vld [vmem:[%s1466_s19 + $0x60] sm:$0xff] }
  0x6a   : > { %v265_v49 = vld [vmem:[%s1466_s19 + $0xe0] sm:$0xff]  ;;  %v250_v50 = vld [vmem:[%s1466_s19 + $0x68] sm:$0xff]  ;;  %v251_v52 = vld [vmem:[%s1466_s19 + $0x70] sm:$0xff] }
  0x6b   : > { %v266_v51 = vld [vmem:[%s1466_s19 + $0xe8] sm:$0xff]  ;;  %v267_v53 = vld [vmem:[%s1466_s19 + $0xf0] sm:$0xff]  ;;  %v252_v54 = vld [vmem:[%s1466_s19 + $0x78] sm:$0xff] }
  0x6c   : > { %981 = vmatpush3.bf16.msra.mxu0 %v978_v12  ;;  %1009 = vmatpush3.bf16.msra.mxu1 %v978_v12  ;;  %v268_v55 = vld [vmem:[%s1466_s19 + $0xf8] sm:$0xff] }
  0x6d   : > { %983 = vmatprep.subr.bf16.mxu0 %v982_v16  ;;  %1002 = vmatprep.subr.bf16.mxu1 %v982_v16 }
  0x70   : > { %985 = vmatpush3.bf16.msra.mxu0 %v982_v16  ;;  %1010 = vmatpush3.bf16.msra.mxu1 %v982_v16 }
  0x71   : > { %987 = vmatprep.subr.bf16.mxu0 %v986_v19  ;;  %1003 = vmatprep.subr.bf16.mxu1 %v986_v19 }
  0x74   : > { %989 = vmatpush3.bf16.msra.mxu0 %v986_v19  ;;  %1011 = vmatpush3.bf16.msra.mxu1 %v986_v19 }
  0x75   : > { %991 = vmatprep.subr.bf16.mxu0 %v990_v22  ;;  %1004 = vmatprep.subr.bf16.mxu1 %v990_v22 }
  0x78   : > { %993 = vmatpush3.bf16.msra.mxu0 %v990_v22  ;;  %1012 = vmatpush3.bf16.msra.mxu1 %v990_v22 }
  0x79   : > { %995 = vmatprep.subr.bf16.mxu0 %v994_v25  ;;  %1005 = vmatprep.subr.bf16.mxu1 %v994_v25 }
  0x7c   : > { %997 = vmatpush3.bf16.msra.mxu0 %v994_v25  ;;  %1013 = vmatpush3.bf16.msra.mxu1 %v994_v25 }
  0x7f   : > { %919 = vmatmul.mubr.f32.vlgmr.msra.gmra.mrb[0].mxu0 %v238_v26  ;;  %943 = vmatmul.mubr.f32.vlgmr.msra.gmra.mrb[0].mxu1 %v254_v27 }
  0x80   : > { %921 = vmatprep.mubr.f32.mxu0 %v239_v28  ;;  %945 = vmatprep.mubr.f32.mxu1 %v255_v29 }
  0x83   : > { %922 = vmatmul.mubr.f32.gmra.mrb[2].mxu0 %v240_v30  ;;  %946 = vmatmul.mubr.f32.gmra.mrb[2].mxu1 %v256_v31 }
  0x84   : > { %924 = vmatprep.mubr.f32.mxu0 %v241_v32  ;;  %948 = vmatprep.mubr.f32.mxu1 %v257_v33 }
  0x87   : > { %925 = vmatmul.mubr.f32.gmra.mrb[4].mxu0 %v242_v34  ;;  %949 = vmatmul.mubr.f32.gmra.mrb[4].mxu1 %v258_v35 }
  0x88   : > { %927 = vmatprep.mubr.f32.mxu0 %v243_v36  ;;  %951 = vmatprep.mubr.f32.mxu1 %v259_v37 }
  0x8b   : > { %928 = vmatmul.mubr.f32.gmra.mrb[6].mxu0 %v244_v38  ;;  %952 = vmatmul.mubr.f32.gmra.mrb[6].mxu1 %v260_v39 }
  0x8c   : > { %930 = vmatprep.mubr.f32.mxu0 %v245_v40  ;;  %954 = vmatprep.mubr.f32.mxu1 %v261_v41 }
  0x8f   : > { %931 = vmatmul.mubr.f32.gmra.mrb[8].mxu0 %v246_v42  ;;  %955 = vmatmul.mubr.f32.gmra.mrb[8].mxu1 %v262_v43 }
  0x90   : > { %933 = vmatprep.mubr.f32.mxu0 %v247_v44  ;;  %957 = vmatprep.mubr.f32.mxu1 %v263_v45 }
  0x93   : > { %934 = vmatmul.mubr.f32.gmra.mrb[10].mxu0 %v248_v46  ;;  %958 = vmatmul.mubr.f32.gmra.mrb[10].mxu1 %v264_v47 }
  0x94   : > { %936 = vmatprep.mubr.f32.mxu0 %v249_v48  ;;  %960 = vmatprep.mubr.f32.mxu1 %v265_v49 }
  0x97   : > { %937 = vmatmul.mubr.f32.gmra.mrb[12].mxu0 %v250_v50  ;;  %961 = vmatmul.mubr.f32.gmra.mrb[12].mxu1 %v266_v51 }
  0x98   : > { %939 = vmatprep.mubr.f32.mxu0 %v251_v52  ;;  %963 = vmatprep.mubr.f32.mxu1 %v267_v53 }
  0x9b   : > { %940 = vmatmul.mubr.f32.gmra.mrb[14].mxu0 %v252_v54  ;;  %964 = vmatmul.mubr.f32.gmra.mrb[14].mxu1 %v268_v55 }
 0x152   : > { %v920_v56 = vpop.f32.mrb[0].mxu0  ;;  %v1508_v57 = vpop.f32.mrb[0].mxu1 }
 0x153   : > { %511 = vst [vmem:[%s1512_s20 + $0x8] sm:$0xff] %v920_v56  ;;  %v580_v58 = vmul.f32 %v920_v56, %v920_v56  ;;  %v351_v59 = vpop.f32.mrb[1].mxu0  ;;  %527 = vst [vmem:[%s1512_s20 + $0x88] sm:$0xff] %v1508_v57  ;;  %v1517_v60 = vpop.f32.mrb[1].mxu1 }
 0x154   : > { %510 = vst [vmem:[%s1512_s20] sm:$0xff] %v351_v59  ;;  %v542_v61 = vadd.f32 %v920_v56, %v351_v59  ;;  %v579_v62 = vmul.f32 %v351_v59, %v351_v59  ;;  %526 = vst [vmem:[%s1512_s20 + $0x80] sm:$0xff] %v1517_v60 }
 0x156   : > { %v611_v63 = vadd.f32 %v580_v58, %v579_v62  ;;  %v923_v0 = vpop.f32.mrb[2].mxu0  ;;  %v1522_v1 = vpop.f32.mrb[2].mxu1 }
 0x157   : > { %513 = vst [vmem:[%s1512_s20 + $0x18] sm:$0xff] %v923_v0  ;;  %v361_v2 = vpop.f32.mrb[3].mxu0  ;;  %529 = vst [vmem:[%s1512_s20 + $0x98] sm:$0xff] %v1522_v1  ;;  %v1527_v3 = vpop.f32.mrb[3].mxu1  ;;  %v582_v6 = vmul.f32 %v923_v0, %v923_v0 }
 0x158   : > { %512 = vst [vmem:[%s1512_s20 + $0x10] sm:$0xff] %v361_v2  ;;  %v543_v4 = vadd.f32 %v542_v61, %v361_v2  ;;  %v581_v5 = vmul.f32 %v361_v2, %v361_v2  ;;  %528 = vst [vmem:[%s1512_s20 + $0x90] sm:$0xff] %v1527_v3 }
 0x15a   : > { %v612_v7 = vadd.f32 %v611_v63, %v581_v5  ;;  %v926_v8 = vpop.f32.mrb[4].mxu0  ;;  %v544_v9 = vadd.f32 %v923_v0, %v543_v4  ;;  %v1532_v10 = vpop.f32.mrb[4].mxu1 }
 0x15b   : > { %515 = vst [vmem:[%s1512_s20 + $0x28] sm:$0xff] %v926_v8  ;;  %v371_v11 = vpop.f32.mrb[5].mxu0  ;;  %531 = vst [vmem:[%s1512_s20 + $0xa8] sm:$0xff] %v1532_v10  ;;  %v1537_v12 = vpop.f32.mrb[5].mxu1  ;;  %v584_v16 = vmul.f32 %v926_v8, %v926_v8 }
 0x15c   : > { %514 = vst [vmem:[%s1512_s20 + $0x20] sm:$0xff] %v371_v11  ;;  %v545_v13 = vadd.f32 %v544_v9, %v371_v11  ;;  %v583_v14 = vmul.f32 %v371_v11, %v371_v11  ;;  %v613_v15 = vadd.f32 %v612_v7, %v582_v6  ;;  %530 = vst [vmem:[%s1512_s20 + $0xa0] sm:$0xff] %v1537_v12 }
 0x15e   : > { %v614_v17 = vadd.f32 %v613_v15, %v583_v14  ;;  %v929_v18 = vpop.f32.mrb[6].mxu0  ;;  %v546_v19 = vadd.f32 %v926_v8, %v545_v13  ;;  %v1542_v20 = vpop.f32.mrb[6].mxu1 }
 0x15f   : > { %517 = vst [vmem:[%s1512_s20 + $0x38] sm:$0xff] %v929_v18  ;;  %v381_v21 = vpop.f32.mrb[7].mxu0  ;;  %533 = vst [vmem:[%s1512_s20 + $0xb8] sm:$0xff] %v1542_v20  ;;  %v1547_v22 = vpop.f32.mrb[7].mxu1  ;;  %v586_v26 = vmul.f32 %v929_v18, %v929_v18 }
 0x160   : > { %516 = vst [vmem:[%s1512_s20 + $0x30] sm:$0xff] %v381_v21  ;;  %v547_v23 = vadd.f32 %v546_v19, %v381_v21  ;;  %v585_v24 = vmul.f32 %v381_v21, %v381_v21  ;;  %v615_v25 = vadd.f32 %v614_v17, %v584_v16  ;;  %532 = vst [vmem:[%s1512_s20 + $0xb0] sm:$0xff] %v1547_v22 }
 0x162   : > { %v616_v27 = vadd.f32 %v615_v25, %v585_v24  ;;  %v932_v28 = vpop.f32.mrb[8].mxu0  ;;  %v548_v29 = vadd.f32 %v929_v18, %v547_v23  ;;  %v1552_v30 = vpop.f32.mrb[8].mxu1 }
 0x163   : > { %519 = vst [vmem:[%s1512_s20 + $0x48] sm:$0xff] %v932_v28  ;;  %v391_v31 = vpop.f32.mrb[9].mxu0  ;;  %535 = vst [vmem:[%s1512_s20 + $0xc8] sm:$0xff] %v1552_v30  ;;  %v1557_v32 = vpop.f32.mrb[9].mxu1  ;;  %v588_v36 = vmul.f32 %v932_v28, %v932_v28 }
 0x164   : > { %518 = vst [vmem:[%s1512_s20 + $0x40] sm:$0xff] %v391_v31  ;;  %v549_v33 = vadd.f32 %v548_v29, %v391_v31  ;;  %v587_v34 = vmul.f32 %v391_v31, %v391_v31  ;;  %v617_v35 = vadd.f32 %v616_v27, %v586_v26  ;;  %534 = vst [vmem:[%s1512_s20 + $0xc0] sm:$0xff] %v1557_v32 }
 0x166   : > { %v618_v37 = vadd.f32 %v617_v35, %v587_v34  ;;  %v935_v38 = vpop.f32.mrb[10].mxu0  ;;  %v550_v39 = vadd.f32 %v932_v28, %v549_v33  ;;  %v1562_v40 = vpop.f32.mrb[10].mxu1 }
 0x167   : > { %521 = vst [vmem:[%s1512_s20 + $0x58] sm:$0xff] %v935_v38  ;;  %v401_v41 = vpop.f32.mrb[11].mxu0  ;;  %537 = vst [vmem:[%s1512_s20 + $0xd8] sm:$0xff] %v1562_v40  ;;  %v1567_v42 = vpop.f32.mrb[11].mxu1  ;;  %v590_v46 = vmul.f32 %v935_v38, %v935_v38 }
 0x168   : > { %520 = vst [vmem:[%s1512_s20 + $0x50] sm:$0xff] %v401_v41  ;;  %v551_v43 = vadd.f32 %v550_v39, %v401_v41  ;;  %v589_v44 = vmul.f32 %v401_v41, %v401_v41  ;;  %v619_v45 = vadd.f32 %v618_v37, %v588_v36  ;;  %536 = vst [vmem:[%s1512_s20 + $0xd0] sm:$0xff] %v1567_v42 }
 0x16a   : > { %v620_v47 = vadd.f32 %v619_v45, %v589_v44  ;;  %v938_v48 = vpop.f32.mrb[12].mxu0  ;;  %v552_v49 = vadd.f32 %v935_v38, %v551_v43  ;;  %v1572_v50 = vpop.f32.mrb[12].mxu1 }
 0x16b   : > { %523 = vst [vmem:[%s1512_s20 + $0x68] sm:$0xff] %v938_v48  ;;  %v411_v51 = vpop.f32.mrb[13].mxu0  ;;  %539 = vst [vmem:[%s1512_s20 + $0xe8] sm:$0xff] %v1572_v50  ;;  %v1579_v52 = vpop.f32.mrb[13].mxu1  ;;  %v592_v56 = vmul.f32 %v938_v48, %v938_v48 }
 0x16c   : > { %522 = vst [vmem:[%s1512_s20 + $0x60] sm:$0xff] %v411_v51  ;;  %v553_v53 = vadd.f32 %v552_v49, %v411_v51  ;;  %v591_v54 = vmul.f32 %v411_v51, %v411_v51  ;;  %v621_v55 = vadd.f32 %v620_v47, %v590_v46  ;;  %538 = vst [vmem:[%s1512_s20 + $0xe0] sm:$0xff] %v1579_v52 }
 0x16e   : > { %v622_v58 = vadd.f32 %v621_v55, %v591_v54  ;;  %v941_v59 = vpop.f32.mrb[14].mxu0  ;;  %v554_v61 = vadd.f32 %v938_v48, %v553_v53  ;;  %v1591_v62 = vpop.f32.mrb[14].mxu1 }
 0x16f   : > { %525 = vst [vmem:[%s1512_s20 + $0x78] sm:$0xff] %v941_v59  ;;  %v421_v63 = vpop.f32.mrb[15].mxu0  ;;  %541 = vst [vmem:[%s1512_s20 + $0xf8] sm:$0xff] %v1591_v62  ;;  %v1596_v0 = vpop.f32.mrb[15].mxu1 }
 0x170   : > { %524 = vst [vmem:[%s1512_s20 + $0x70] sm:$0xff] %v421_v63  ;;  %v555_v2 = vadd.f32 %v554_v61, %v421_v63  ;;  %v593_v4 = vmul.f32 %v421_v63, %v421_v63  ;;  %v623_v5 = vadd.f32 %v622_v58, %v592_v56  ;;  %540 = vst [vmem:[%s1512_s20 + $0xf0] sm:$0xff] %v1596_v0 }
 0x171   : > { %1167 = shalt.err (!%p1164_p5)
}
 0x172   : > { %s1168_s4 = scalar_lea.hbm %s1587_s9, 4096  ;;  %s1172_s7 = scalar_lea.hbm %s1729_s2, 8192 }
 0x173   : > { %p1169_p9 = scmp.ne.s32.totalorder %s1587_s9, %s1168_s4  ;;  %p1173_p3 = scmp.lt.u32.totalorder %s1587_s9, %s1729_s2 }
 0x174   : > { %p1174_p7 = scmp.lt.u32.totalorder %s1172_s7, %s1168_s4  ;;  %p1176_p4 = scmp.lt.u32.totalorder %s1168_s4, %s1587_s9 }
 0x175   : > { %p1170_p1 = pnand %p1169_p9, %p1401_p10 }
 0x176   : > { %p1175_p13 = por %p1174_p7, %p1173_p3 }
 0x177   : > { %p1171_p2 = pneg %p1170_p1 }
 0x178   : > { %p1177_p6 = por %p1176_p4, %p1175_p13 }
 0x17a   : > { %p1178_p8 = pnand %p1177_p6, %p1171_p2 }
 0x17c   : > { %1181 = shalt.err (!%p1178_p8)
}
 0x17d   : > { %s1279_s22 = smov 128   ;;  %s1280_s10 = smov 8   ;;  %v594_v6 = vmul.f32 %v941_v59, %v941_v59  ;;  %v556_v7 = vadd.f32 %v941_v59, %v555_v2  ;;  %v624_v8 = vadd.f32 %v623_v5, %v593_v4  ;;  %v595_v9 = vmul.f32 %v1517_v60, %v1517_v60 }
 0x17e   : > { %1020 = dma.vmem_to_hbm [thread:$0]  (%p1401_p10), %s1589_s24, 4096, %s1587_s9, %s652_s18, %s1279_s22, %s1279_s22, %s1280_s10   ;;  %v596_v14 = vmul.f32 %v1508_v57, %v1508_v57  ;;  %v597_v17 = vmul.f32 %v1527_v3, %v1527_v3  ;;  %v598_v21 = vmul.f32 %v1522_v1, %v1522_v1  ;;  %v609_v48 = vmul.f32 %v1596_v0, %v1596_v0 }
 0x17f   : > { %v625_v11 = vadd.f32 %v624_v8, %v594_v6  ;;  %v557_v13 = vadd.f32 %v556_v7, %v1517_v60  ;;  %v599_v60 = vmul.f32 %v1537_v12, %v1537_v12  ;;  %s828_s24 = sshll.u32 %s1460_s30, 1  ;;  %s833_s11 = sshll.u32 %s1264_s15, 5  ;;  %vm648_vm0 = vcmask 1040384  }
 0x180   : > { %s234_s9 = scalar_lea.vmem [#allocation8], %s828_s24  ;;  %s1678_s26 = scalar_lea.hbm %s1730_s3, %s833_s11 }
 0x181   : > { %v626_v15 = vadd.f32 %v625_v11, %v595_v9  ;;  %v558_v16 = vadd.f32 %v1508_v57, %v557_v13  ;;  %v600_v57 = vmul.f32 %v1532_v10, %v1532_v10  ;;  %s689_s18 = sshll.u32 %s234_s9, 4  ;;  %s657_s21 = scalar_lea.sflag [#allocation9], %s1460_s30  ;;  %s1680_s18 = int_to_ptr.vmem [resolvable:$true] %s689_s18 }
 0x182   : > { %s1182_s4 = scalar_lea.vmem %s1680_s18, 32  ;;  %s1281_s15 = smov [#allocation8]  }
 0x183   : > { %v559_v18 = vadd.f32 %v558_v16, %v1527_v3  ;;  %v627_v19 = vadd.f32 %v626_v15, %v596_v14  ;;  %v601_v3 = vmul.f32 %v1547_v22, %v1547_v22  ;;  %p1183_p12 = scmp.ne.s32.totalorder %s1680_s18, %s1182_s4  ;;  %s1186_s6 = sshll.u32 %s1281_s15, 4  ;;  %s1187_s6 = int_to_ptr.vmem [resolvable:$false] %s1186_s6 }
 0x184   : > { %s1188_s29 = scalar_lea.vmem %s1187_s6, 64  ;;  %p1189_p5 = scmp.lt.s32.totalorder %s1680_s18, %s1187_s6 }
 0x185   : > { %v628_v23 = vadd.f32 %v627_v19, %v597_v17  ;;  %v560_v24 = vadd.f32 %v1522_v1, %v559_v18  ;;  %v602_v1 = vmul.f32 %v1542_v20, %v1542_v20  ;;  %p1184_p11 = pnand %p1183_p12, %p1401_p10  ;;  %p1190_p9 = scmp.lt.s32.totalorder %s1188_s29, %s1182_s4 }
 0x187   : > { %v561_v25 = vadd.f32 %v560_v24, %v1537_v12  ;;  %v629_v26 = vadd.f32 %v628_v23, %v598_v21  ;;  %v603_v12 = vmul.f32 %v1557_v32, %v1557_v32  ;;  %p1185_p0 = pneg %p1184_p11  ;;  %p1191_p1 = por %p1190_p9, %p1189_p5 }
 0x189   : > { %v630_v27 = vadd.f32 %v629_v26, %v599_v60  ;;  %v562_v28 = vadd.f32 %v1532_v10, %v561_v25  ;;  %v604_v10 = vmul.f32 %v1552_v30, %v1552_v30  ;;  %p1192_p2 = pnand %p1191_p1, %p1185_p0 }
 0x18b   : > { %v563_v29 = vadd.f32 %v562_v28, %v1547_v22  ;;  %v631_v31 = vadd.f32 %v630_v27, %v600_v57  ;;  %v605_v22 = vmul.f32 %v1567_v42, %v1567_v42 }
 0x18d   : > { %v632_v33 = vadd.f32 %v631_v31, %v601_v3  ;;  %v564_v34 = vadd.f32 %v1542_v20, %v563_v29  ;;  %v606_v20 = vmul.f32 %v1562_v40, %v1562_v40 }
 0x18f   : > { %v565_v35 = vadd.f32 %v564_v34, %v1557_v32  ;;  %v633_v36 = vadd.f32 %v632_v33, %v602_v1  ;;  %v607_v32 = vmul.f32 %v1579_v52, %v1579_v52 }
 0x191   : > { %v634_v37 = vadd.f32 %v633_v36, %v603_v12  ;;  %v566_v38 = vadd.f32 %v1552_v30, %v565_v35  ;;  %v608_v30 = vmul.f32 %v1572_v50, %v1572_v50 }
 0x193   : > { %v567_v39 = vadd.f32 %v566_v38, %v1567_v42  ;;  %v635_v41 = vadd.f32 %v634_v37, %v604_v10 }
 0x195   : > { %v636_v43 = vadd.f32 %v635_v41, %v605_v22  ;;  %v568_v44 = vadd.f32 %v1562_v40, %v567_v39  ;;  %v610_v40 = vmul.f32 %v1591_v62, %v1591_v62 }
 0x197   : > { %v569_v45 = vadd.f32 %v568_v44, %v1579_v52  ;;  %v637_v46 = vadd.f32 %v636_v43, %v606_v20 }
 0x199   : > { %v638_v47 = vadd.f32 %v637_v46, %v607_v32  ;;  %v570_v42 = vadd.f32 %v1572_v50, %v569_v45 }
 0x19b   : > { %v571_v49 = vadd.f32 %v570_v42, %v1596_v0  ;;  %v639_v51 = vadd.f32 %v638_v47, %v608_v30 }
 0x19d   : > { %v572_v52 = vadd.f32 %v1591_v62, %v571_v49  ;;  %v640_v53 = vadd.f32 %v639_v51, %v609_v48 }
 0x19f   : > { %v573_v54 = vrot.slane %v572_v52, 4  ;;  %v641_v55 = vadd.f32 %v640_v53, %v610_v40 }
 0x1a1   : > { %v574_v56 = vadd.f32 %v573_v54, %v572_v52  ;;  %v642_v58 = vrot.slane %v641_v55, 4 }
 0x1a3   : > { %v575_v59 = vrot.slane %v574_v56, 2  ;;  %v643_v61 = vadd.f32 %v642_v58, %v641_v55 }
 0x1a5   : > { %v576_v50 = vadd.f32 %v575_v59, %v574_v56  ;;  %v644_v63 = vrot.slane %v643_v61, 2 }
 0x1a7   : > { %v577_v2 = vrot.slane %v576_v50, 1  ;;  %v645_v0 = vadd.f32 %v644_v63, %v643_v61 }
 0x1a9   : > { %v646_v4 = vrot.slane %v645_v0, 1  ;;  %v578_v62 = vadd.f32 %v577_v2, %v576_v50 }
 0x1ab   : > { %v647_v5 = vadd.f32 %v646_v4, %v645_v0 }
 0x1ad   : > { %v649_v6 = vsel %vm648_vm0, %v578_v62, %v647_v5 }
 0x1ae   : > { %650 = vst [vmem:[%s234_s9] sm:$0x3] %v649_v6 }
 0x1af   : > { %1195 = shalt.err (!%p1192_p2)
}
 0x1b0   : > { %s1196_s30 = scalar_lea.hbm %s1678_s26, 32  ;;  %s1200_s20 = scalar_lea.hbm %s1730_s3, 64 }
 0x1b1   : > { %p1197_p3 = scmp.ne.s32.totalorder %s1678_s26, %s1196_s30  ;;  %p1201_p4 = scmp.lt.u32.totalorder %s1678_s26, %s1730_s3 }
 0x1b2   : > { %p1202_p6 = scmp.lt.u32.totalorder %s1200_s20, %s1196_s30  ;;  %p1204_p12 = scmp.lt.u32.totalorder %s1196_s30, %s1678_s26 }
 0x1b3   : > { %p1198_p7 = pnand %p1197_p3, %p1401_p10 }
 0x1b4   : > { %p1203_p8 = por %p1202_p6, %p1201_p4 }
 0x1b5   : > { %p1199_p13 = pneg %p1198_p7 }
 0x1b6   : > { %p1205_p11 = por %p1204_p12, %p1203_p8 }
 0x1b8   : > { %p1206_p0 = pnand %p1205_p11, %p1199_p13 }
 0x1ba   : > { %1209 = shalt.err (!%p1206_p0)
}
 0x1bb   : > { %1021 = dma.vmem_to_hbm [thread:$0]  (%p1401_p10), %s1680_s18, 32, %s1678_s26, %s657_s21  }
 0x1bc PF: > { %s701_s24 = sand.u32 1, %s1252_s12   ;;  %p1748_p5 = scmp.ne.s32.totalorder %s1738_s23, 0 }
 0x1bd   : > { %p1749_p9 = scmp.ge.s32.totalorder %s1272_s17, 2  ;;  %s702_s11 = scalar_lea.sflag [#allocation4], %s701_s24 }
 0x1bf   : > { %p1033_p1 = pnand %p1749_p9, %p1748_p5 }
 0x1c1   : > { %1243 = dma.done.wait (!%p1033_p1), %s702_s11, 4096  }
 0x1c2   : > { %1245 = vsyncadd (!%p1033_p1), %s702_s11, 4294963200  ;;  %s711_s9 = scalar_lea.sflag [#allocation9], %s701_s24 }
 0x1c3   : > { %1247 = dma.done.wait (!%p1033_p1), %s711_s9, 32  }
 0x1c4   : > { %1249 = vsyncadd (!%p1033_p1), %s711_s9, 4294967264  ;;  %s24_s17 = sadd.s32 1, %s1272_s17   ;;  %s1750_s12 = smov %s1256_s13 }
 0x1c5   : > { %p21_p2 = scmp.ge.s32.totalorder %s24_s17, 4   ;;  %s1751_s13 = smov %s1260_s14 }
 0x1c6   : > { %s1752_s14 = smov %s1410_s5  ;;  %s1753_s15 = smov %s1268_s16 }
 0x1c7   : > { %s1754_s16 = smov %s1756_s28  ;;  %23 = sbr.rel (!%p21_p2) target bundleno = 9 (0x9), region = 94 }
 0x1ce   :  { %716 = vsyncpa [#allocation3], 1 }
 0x1cf   :  { %718 = vsyncpa [#allocation3 + $0x1], 1 }
 0x1d0   :  { %719 = vsyncpa [#allocation6], 1 }
 0x1d1   :  { %720 = vsyncpa [#allocation4], 1 }
 0x1d2   :  { %722 = vsyncpa [#allocation4 + $0x1], 1 }
 0x1d3   :  { %723 = vsyncpa [#allocation9], 1 }
 0x1d4   :  { %725 = vsyncpa [#allocation9 + $0x1], 1 }

</bundles_post_ra>
